<compile_context>
chip_gen: v7x
topology: tpu7x:2x2x1
jax: 0.10.0
libtpu: 0.0.40
codegen_flags: <defaults>
</compile_context>

<pallas_src>
import functools
import math

import jax
import jax.numpy as jnp
from jax.experimental import pallas as pl
from jax.experimental.pallas import tpu as pltpu


# ----------------------------------------------------------------------------
# Pallas kernel: full res_projection stack on a lane-dense (rows, C*T) slab.
# Rows (b, n) are fully independent (channel mixing lives inside the C*T axis).
# ----------------------------------------------------------------------------
def _res_proj_kernel(x_ref,                      # (Rt, D)      f32
                     mlp_w_ref, mlp_b_ref,       # (L, D, 2D) bf16 / (L, 1, 2D) f32
                     gcn_w_ref, gcn_b_ref,       # (L, D, 2D) bf16 / (L, 1, 2D) f32
                     out_ref,                    # (Rt, D)      f32
                     *, layers, d):
    x = x_ref[...]
    for l in range(layers):                      # static unroll (L is small)
        res = x
        xb = x.astype(jnp.bfloat16)
        # ---- gated_mlp: [value | gate] in one lane-dense matmul ----
        vg = jnp.dot(xb, mlp_w_ref[l], preferred_element_type=jnp.float32) + mlp_b_ref[l]
        value = vg[:, :d]
        gate = jax.nn.sigmoid(vg[:, d:])
        x = x + gate * (value - x)               # == gate*value + (1-gate)*x
        x = jnp.tanh(x)
        xb = x.astype(jnp.bfloat16)
        # ---- gated_gcn: adjacency+update folded; [update | gate] in one matmul ----
        ug = jnp.dot(xb, gcn_w_ref[l], preferred_element_type=jnp.float32) + gcn_b_ref[l]
        g = ug[:, :d]
        gate2 = jax.nn.sigmoid(ug[:, d:])
        xg = x + gate2 * (g - x)                 # == gate2*g + (1-gate2)*x
        x = res + jnp.tanh(xg)
    out_ref[...] = x


def res_projection_forward(x_flat, w):
    """x_flat: (R, D) with R = B*N, D = C*T.  Returns (R, D) f32."""
    R, D = x_flat.shape
    L = w["mlp_w"].shape[0]
    # Row tiling: whole block at toy size; 512-row tiles (parallel -> megacore) at scale.
    tile_r = 512 if (R > 512 and R % 512 == 0) else R
    grid = (R // tile_r,)

    wspec = pl.BlockSpec((L, D, 2 * D), lambda i: (0, 0, 0))
    bspec = pl.BlockSpec((L, 1, 2 * D), lambda i: (0, 0, 0))

    return pl.pallas_call(
        functools.partial(_res_proj_kernel, layers=L, d=D),
        out_shape=jax.ShapeDtypeStruct((R, D), jnp.float32),
        grid=grid,
        in_specs=[
            pl.BlockSpec((tile_r, D), lambda i: (i, 0)),   # x rows
            wspec, bspec,                                  # mlp  [value|gate]
            wspec, bspec,                                  # gcn  [update|gate]
        ],
        out_specs=pl.BlockSpec((tile_r, D), lambda i: (i, 0)),
        compiler_params=pltpu.CompilerParams(dimension_semantics=("parallel",)),
    )(x_flat, w["mlp_w"], w["mlp_b"], w["gcn_w"], w["gcn_b"])


# ----------------------------------------------------------------------------
# JAX glue: fold adjacency softmax + per-head update proj into per-layer
# effective weights; lift per-channel time Linears to block-diagonal matrices;
# concatenate value/gate weights so each gated block is one (D, 2D) matmul.
# ----------------------------------------------------------------------------
def prepare_res_proj_weights(params, C, T):
    L = params["mlp_uw"].shape[0]
    H = params["nodes1"].shape[1]
    eyeC = jnp.eye(C, dtype=jnp.float32)

    # adjacency per layer/head: softmax(nodes1 @ nodes2^T - 1e9*I) over last dim
    logits = jnp.einsum("lhcd,lhkd->lhck", params["nodes1"], params["nodes2"])
    logits = logits + (-1.0e9) * eyeC[None, None]
    adj = jax.nn.softmax(logits, axis=-1)                     # (L, H, C, C)  adj[l,h,o,i]

    def blockdiag(w):                                         # (L, T, T) (in,out) -> (L, C*T, C*T)
        return jnp.einsum("cd,lst->lcsdt", eyeC, w).reshape(L, C * T, C * T)

    def tile_bias(b):                                         # (L, T) -> (L, 1, C*T)
        return jnp.tile(b, (1, C))[:, None, :].astype(jnp.float32)

    # effective gcn update:  Big[l, i*T+s, o*T+t] = sum_h adj[l,h,o,i] * Wu[l, h*T+s, t]
    Wu = params["gcn_uw"].reshape(L, H, T, T)
    gcn_uw = jnp.einsum("lhoi,lhst->lisot", adj, Wu).reshape(L, C * T, C * T)

    bf16 = jnp.bfloat16
    mlp_w = jnp.concatenate(
        [blockdiag(params["mlp_uw"]), blockdiag(params["mlp_gw"])], axis=-1).astype(bf16)
    mlp_b = jnp.concatenate(
        [tile_bias(params["mlp_ub"]), tile_bias(params["mlp_gb"])], axis=-1)
    gcn_w = jnp.concatenate(
        [gcn_uw, blockdiag(params["gcn_gw"])], axis=-1).astype(bf16)
    gcn_b = jnp.concatenate(
        [tile_bias(params["gcn_ub"]), tile_bias(params["gcn_gb"])], axis=-1)
    return {"mlp_w": mlp_w, "mlp_b": mlp_b, "gcn_w": gcn_w, "gcn_b": gcn_b}


# ----------------------------------------------------------------------------
# Small Pallas kernel: Linear over the last dim (poly_mlp stand-in), M-tiled.
# ----------------------------------------------------------------------------
def _linear_kernel(x_ref, w_ref, b_ref, o_ref):
    o_ref[...] = jnp.dot(x_ref[...].astype(jnp.bfloat16), w_ref[...],
                         preferred_element_type=jnp.float32) + b_ref[...]


def linear_lastdim(x, w, b):
    lead = x.shape[:-1]
    Tin, Tout = x.shape[-1], w.shape[1]
    M = math.prod(lead)
    x2 = x.reshape(M, Tin)
    tile_m = 512 if (M > 512 and M % 512 == 0) else M
    out = pl.pallas_call(
        _linear_kernel,
        out_shape=jax.ShapeDtypeStruct((M, Tout), jnp.float32),
        grid=(M // tile_m,),
        in_specs=[pl.BlockSpec((tile_m, Tin), lambda i: (i, 0)),
                  pl.BlockSpec((Tin, Tout), lambda i: (0, 0)),
                  pl.BlockSpec((1, Tout), lambda i: (0, 0))],
        out_specs=pl.BlockSpec((tile_m, Tout), lambda i: (i, 0)),
        compiler_params=pltpu.CompilerParams(dimension_semantics=("parallel",)),
    )(x2, w.astype(jnp.bfloat16), b)
    return out.reshape(*lead, Tout)


# ----------------------------------------------------------------------------
# JAX glue for the remaining Model pieces
# ----------------------------------------------------------------------------
def dft_choose(x, split_point):
    # TODO(synk): FFT has no Pallas equivalent; stays in XLA.
    freq = jnp.fft.rfft(x, axis=-1)
    freq = freq.at[..., split_point:].set(0.0)
    return jnp.fft.irfft(freq, n=x.shape[-1], axis=-1)


def ar_conv_unique(trend, kernel_logits):
    # TODO(synk): AR_Conv_unique definition not provided; stand-in is a depthwise
    # valid 1D conv over time with per-channel softmax-normalized weights.
    w = jax.nn.softmax(kernel_logits, axis=-1)                # (C, K)
    K = w.shape[-1]
    t_out = trend.shape[-1] - K + 1
    out = jnp.zeros(trend.shape[:-1] + (t_out,), jnp.float32)
    for k in range(K):
        out = out + w[None, :, None, k:k + 1] * trend[..., k:k + t_out]
    return out


def model_forward(cfg, params, x, x_mark, y_mark):
    B, C, N, Tin = x.shape
    move_step = cfg["move_step"]

    # res_projection implicitly requires inp_len == pred_len (residual add inside
    # the PyTorch module only type-checks in that case).
    assert cfg["inp_len"] == cfg["pred_len"], "res_projection requires inp_len == pred_len"

    if cfg["use_dft"]:
        x_trend = dft_choose(x, cfg["split_point"])
    else:
        x_trend = ar_conv_unique(x, params["trend_smooth_w"])  # TODO(synk): sym_pad path n/a
    x_detrend = x - x_trend
    # TODO(synk): FDEmbedding (period_mlp) definition not provided; seasonal stand-in = 0.
    x_season = jnp.zeros_like(x)
    x_res = x_detrend - x_season

    # TODO(synk): Multi_Linear (poly_mlp) definition not provided; stand-in = shared
    # Linear(inp_len -> pred_len) over time, executed as a Pallas matmul kernel.
    y_trend = linear_lastdim(x_trend, params["poly_w"], params["poly_b"])

    trend = jnp.concatenate([x_trend[..., -(move_step - 1):], y_trend], axis=-1)
    y_trend = ar_conv_unique(trend, params["trend_smooth_w"])

    # --- residual projection (fused Pallas kernel on lane-dense (B*N, C*T) slab) ---
    rp_w = prepare_res_proj_weights(params, C, Tin)
    x_flat = jnp.transpose(x_res, (0, 2, 1, 3)).reshape(B * N, C * Tin)
    y_flat = res_projection_forward(x_flat, rp_w)
    y_res = jnp.transpose(y_flat.reshape(B, N, C, Tin), (0, 2, 1, 3))

    # TODO(synk): FDEmbedding (period_mlp) not provided; y_season stand-in = 0
    # (the real module feeds deseason = y_trend + y_res into it).
    y_season = jnp.zeros_like(y_trend)

    y = y_trend + y_season + y_res
    return y


# ----------------------------------------------------------------------------
# Deterministic parameter init (shapes match the PyTorch module's __init__)
# ----------------------------------------------------------------------------
def init_params(key, cfg):
    C, Tin, Tout = cfg["c_in"], cfg["inp_len"], cfg["pred_len"]
    H, L, hid, K = cfg["adj_heads"], cfg["res_layers"], cfg["channels_emb_dim"], cfg["move_step"]

    def lin_w(k, fan_in, shape):
        b = 1.0 / float(fan_in) ** 0.5
        return jax.random.uniform(k, shape, jnp.float32, -b, b)

    keys = iter(jax.random.split(key, 12 * L + 8))
    mlp_uw, mlp_ub, mlp_gw, mlp_gb = [], [], [], []
    gcn_gw, gcn_gb, gcn_uw, gcn_ub = [], [], [], []
    n1s, n2s = [], []
    for _ in range(L):
        mlp_uw.append(lin_w(next(keys), Tin, (Tout, Tin)).T)
        mlp_ub.append(lin_w(next(keys), Tin, (Tout,)))
        mlp_gw.append(lin_w(next(keys), Tin, (Tout, Tin)).T)
        mlp_gb.append(lin_w(next(keys), Tin, (Tout,)))
        n1s.append(jax.random.normal(next(keys), (H, C, hid), jnp.float32))
        n2s.append(jax.random.normal(next(keys), (H, C, hid), jnp.float32))
        gcn_gw.append(lin_w(next(keys), Tin, (Tout, Tin)).T)
        gcn_gb.append(lin_w(next(keys), Tin, (Tout,)))
        gcn_uw.append(lin_w(next(keys), H * Tin, (Tout, H * Tin)).T)
        gcn_ub.append(lin_w(next(keys), H * Tin, (Tout,)))

    return {
        "mlp_uw": jnp.stack(mlp_uw),                          # (L, Tin, Tout)  (in, out)
        "mlp_ub": jnp.stack(mlp_ub),                          # (L, Tout)
        "mlp_gw": jnp.stack(mlp_gw),
        "mlp_gb": jnp.stack(mlp_gb),
        "gcn_gw": jnp.stack(gcn_gw),
        "gcn_gb": jnp.stack(gcn_gb),
        "gcn_uw": jnp.stack(gcn_uw),                          # (L, H*Tin, Tout)
        "gcn_ub": jnp.stack(gcn_ub),
        "nodes1": jnp.stack(n1s),                             # (L, H, C, hid)
        "nodes2": jnp.stack(n2s),
        "poly_w": lin_w(next(keys), Tin, (Tout, Tin)).T,      # (Tin, Tout)
        "poly_b": lin_w(next(keys), Tin, (1, Tout)),
        "trend_smooth_w": jax.random.normal(next(keys), (C, K), jnp.float32),
    }


if __name__ == "__main__":
    cfg = dict(c_in=4, c_out=4, c_date=3, dropout=0.3, n_nodes=8,
               inp_len=16, pred_len=16, adj_heads=3, move_step=3,
               poly_order=2, res_layers=2, embed_period=24, period_heads=2,
               channels_emb_dim=10, use_dft=True, split_point=4, device="cpu")

    key = jax.random.PRNGKey(0)
    kx, kxm, kym, kp = jax.random.split(key, 4)
    x = jax.random.normal(kx, (2, cfg["c_in"], cfg["n_nodes"], cfg["inp_len"]), jnp.float32)
    x_mark = jax.random.normal(kxm, (2, cfg["c_date"], cfg["n_nodes"], cfg["inp_len"]), jnp.float32)
    y_mark = jax.random.normal(kym, (2, cfg["c_date"], cfg["n_nodes"], cfg["pred_len"]), jnp.float32)
    params = init_params(kp, cfg)

    fwd = jax.jit(functools.partial(model_forward, cfg))
    y = fwd(params, x, x_mark, y_mark)
    jax.block_until_ready(y)

    assert y.shape == (2, cfg["c_in"], cfg["n_nodes"], cfg["pred_len"]), y.shape
    assert bool(jnp.all(jnp.isfinite(y)))
    print("KERNEL_OK")
</pallas_src>

<mosaic_0001>
module attributes {stable_mosaic.version = 11 : i64} {
  func.func @_res_proj_kernel(%arg0: i32, %arg1: memref<16x64xf32, #tpu.memory_space<vmem>>, %arg2: memref<2x64x128xbf16, #tpu.memory_space<vmem>>, %arg3: memref<2x1x128xf32, #tpu.memory_space<vmem>>, %arg4: memref<2x64x128xbf16, #tpu.memory_space<vmem>>, %arg5: memref<2x1x128xf32, #tpu.memory_space<vmem>>, %arg6: memref<16x64xf32, #tpu.memory_space<vmem>>) attributes {dimension_semantics = [#tpu.dimension_semantics<parallel>], iteration_bounds = array<i64: 1>, scalar_prefetch = 0 : i64, scratch_operands = 0 : i64, tpu.core_type = #tpu.core_type<tc>, window_params = [{transform_indices = @transform_0, window_bounds = array<i64: 16, 64>}, {pipeline_mode = #tpu.pipeline_mode<synchronous>, transform_indices = @transform_1, window_bounds = array<i64: 2, 64, 128>}, {pipeline_mode = #tpu.pipeline_mode<synchronous>, transform_indices = @transform_2, window_bounds = array<i64: 2, 1, 128>}, {pipeline_mode = #tpu.pipeline_mode<synchronous>, transform_indices = @transform_3, window_bounds = array<i64: 2, 64, 128>}, {pipeline_mode = #tpu.pipeline_mode<synchronous>, transform_indices = @transform_4, window_bounds = array<i64: 2, 1, 128>}, {transform_indices = @transform_5, window_bounds = array<i64: 16, 64>}]} {
    %c0 = arith.constant 0 : index
    %c0_0 = arith.constant 0 : index
    %0 = vector.load %arg1[%c0, %c0_0] : memref<16x64xf32, #tpu.memory_space<vmem>>, vector<16x64xf32>
    %1 = arith.truncf %0 : vector<16x64xf32> to vector<16x64xbf16>
    %c0_1 = arith.constant 0 : index
    %c0_2 = arith.constant 0 : index
    %c0_3 = arith.constant 0 : index
    %2 = vector.load %arg2[%c0_1, %c0_2, %c0_3] : memref<2x64x128xbf16, #tpu.memory_space<vmem>>, vector<1x64x128xbf16>
    %3 = vector.shape_cast %2 : vector<1x64x128xbf16> to vector<64x128xbf16>
    %cst = arith.constant dense<0.000000e+00> : vector<16x128xf32>
    %4 = tpu.matmul %1, %3, %cst {dimension_numbers = #tpu.dot_dimension_numbers<[1], [0], [0], [1], [0, 0, 1, 1], [], []>} : vector<16x64xbf16>, vector<64x128xbf16>, vector<16x128xf32> -> vector<16x128xf32>
    %c0_4 = arith.constant 0 : index
    %c0_5 = arith.constant 0 : index
    %c0_6 = arith.constant 0 : index
    %5 = vector.load %arg3[%c0_4, %c0_5, %c0_6] : memref<2x1x128xf32, #tpu.memory_space<vmem>>, vector<1x1x128xf32>
    %6 = vector.shape_cast %5 : vector<1x1x128xf32> to vector<1x128xf32>
    %7 = vector.broadcast %6 : vector<1x128xf32> to vector<16x128xf32>
    %8 = arith.addf %4, %7 : vector<16x128xf32>
    %9 = vector.extract_strided_slice %8 {offsets = [0, 0], sizes = [16, 64], strides = [1, 1]} : vector<16x128xf32> to vector<16x64xf32>
    %10 = vector.extract_strided_slice %8 {offsets = [0, 64], sizes = [16, 64], strides = [1, 1]} : vector<16x128xf32> to vector<16x64xf32>
    %11 = arith.negf %10 : vector<16x64xf32>
    %12 = math.exp %11 : vector<16x64xf32>
    %cst_7 = arith.constant 1.000000e+00 : f32
    %13 = vector.broadcast %cst_7 : f32 to vector<16x64xf32>
    %14 = arith.addf %13, %12 : vector<16x64xf32>
    %15 = arith.divf %13, %14 : vector<16x64xf32>
    %16 = arith.subf %9, %0 : vector<16x64xf32>
    %17 = arith.mulf %15, %16 : vector<16x64xf32>
    %18 = arith.addf %0, %17 : vector<16x64xf32>
    %19 = math.tanh %18 : vector<16x64xf32>
    %20 = arith.truncf %19 : vector<16x64xf32> to vector<16x64xbf16>
    %c0_8 = arith.constant 0 : index
    %c0_9 = arith.constant 0 : index
    %c0_10 = arith.constant 0 : index
    %21 = vector.load %arg4[%c0_8, %c0_9, %c0_10] : memref<2x64x128xbf16, #tpu.memory_space<vmem>>, vector<1x64x128xbf16>
    %22 = vector.shape_cast %21 : vector<1x64x128xbf16> to vector<64x128xbf16>
    %cst_11 = arith.constant dense<0.000000e+00> : vector<16x128xf32>
    %23 = tpu.matmul %20, %22, %cst_11 {dimension_numbers = #tpu.dot_dimension_numbers<[1], [0], [0], [1], [0, 0, 1, 1], [], []>} : vector<16x64xbf16>, vector<64x128xbf16>, vector<16x128xf32> -> vector<16x128xf32>
    %c0_12 = arith.constant 0 : index
    %c0_13 = arith.constant 0 : index
    %c0_14 = arith.constant 0 : index
    %24 = vector.load %arg5[%c0_12, %c0_13, %c0_14] : memref<2x1x128xf32, #tpu.memory_space<vmem>>, vector<1x1x128xf32>
    %25 = vector.shape_cast %24 : vector<1x1x128xf32> to vector<1x128xf32>
    %26 = vector.broadcast %25 : vector<1x128xf32> to vector<16x128xf32>
    %27 = arith.addf %23, %26 : vector<16x128xf32>
    %28 = vector.extract_strided_slice %27 {offsets = [0, 0], sizes = [16, 64], strides = [1, 1]} : vector<16x128xf32> to vector<16x64xf32>
    %29 = vector.extract_strided_slice %27 {offsets = [0, 64], sizes = [16, 64], strides = [1, 1]} : vector<16x128xf32> to vector<16x64xf32>
    %30 = arith.negf %29 : vector<16x64xf32>
    %31 = math.exp %30 : vector<16x64xf32>
    %cst_15 = arith.constant 1.000000e+00 : f32
    %32 = vector.broadcast %cst_15 : f32 to vector<16x64xf32>
    %33 = arith.addf %32, %31 : vector<16x64xf32>
    %34 = arith.divf %32, %33 : vector<16x64xf32>
    %35 = arith.subf %28, %19 : vector<16x64xf32>
    %36 = arith.mulf %34, %35 : vector<16x64xf32>
    %37 = arith.addf %19, %36 : vector<16x64xf32>
    %38 = math.tanh %37 : vector<16x64xf32>
    %39 = arith.addf %0, %38 : vector<16x64xf32>
    %40 = arith.truncf %39 : vector<16x64xf32> to vector<16x64xbf16>
    %c1 = arith.constant 1 : index
    %c0_16 = arith.constant 0 : index
    %c0_17 = arith.constant 0 : index
    %41 = vector.load %arg2[%c1, %c0_16, %c0_17] : memref<2x64x128xbf16, #tpu.memory_space<vmem>>, vector<1x64x128xbf16>
    %42 = vector.shape_cast %41 : vector<1x64x128xbf16> to vector<64x128xbf16>
    %cst_18 = arith.constant dense<0.000000e+00> : vector<16x128xf32>
    %43 = tpu.matmul %40, %42, %cst_18 {dimension_numbers = #tpu.dot_dimension_numbers<[1], [0], [0], [1], [0, 0, 1, 1], [], []>} : vector<16x64xbf16>, vector<64x128xbf16>, vector<16x128xf32> -> vector<16x128xf32>
    %c1_19 = arith.constant 1 : index
    %c0_20 = arith.constant 0 : index
    %c0_21 = arith.constant 0 : index
    %44 = vector.load %arg3[%c1_19, %c0_20, %c0_21] : memref<2x1x128xf32, #tpu.memory_space<vmem>>, vector<1x1x128xf32>
    %45 = vector.shape_cast %44 : vector<1x1x128xf32> to vector<1x128xf32>
    %46 = vector.broadcast %45 : vector<1x128xf32> to vector<16x128xf32>
    %47 = arith.addf %43, %46 : vector<16x128xf32>
    %48 = vector.extract_strided_slice %47 {offsets = [0, 0], sizes = [16, 64], strides = [1, 1]} : vector<16x128xf32> to vector<16x64xf32>
    %49 = vector.extract_strided_slice %47 {offsets = [0, 64], sizes = [16, 64], strides = [1, 1]} : vector<16x128xf32> to vector<16x64xf32>
    %50 = arith.negf %49 : vector<16x64xf32>
    %51 = math.exp %50 : vector<16x64xf32>
    %cst_22 = arith.constant 1.000000e+00 : f32
    %52 = vector.broadcast %cst_22 : f32 to vector<16x64xf32>
    %53 = arith.addf %52, %51 : vector<16x64xf32>
    %54 = arith.divf %52, %53 : vector<16x64xf32>
    %55 = arith.subf %48, %39 : vector<16x64xf32>
    %56 = arith.mulf %54, %55 : vector<16x64xf32>
    %57 = arith.addf %39, %56 : vector<16x64xf32>
    %58 = math.tanh %57 : vector<16x64xf32>
    %59 = arith.truncf %58 : vector<16x64xf32> to vector<16x64xbf16>
    %c1_23 = arith.constant 1 : index
    %c0_24 = arith.constant 0 : index
    %c0_25 = arith.constant 0 : index
    %60 = vector.load %arg4[%c1_23, %c0_24, %c0_25] : memref<2x64x128xbf16, #tpu.memory_space<vmem>>, vector<1x64x128xbf16>
    %61 = vector.shape_cast %60 : vector<1x64x128xbf16> to vector<64x128xbf16>
    %cst_26 = arith.constant dense<0.000000e+00> : vector<16x128xf32>
    %62 = tpu.matmul %59, %61, %cst_26 {dimension_numbers = #tpu.dot_dimension_numbers<[1], [0], [0], [1], [0, 0, 1, 1], [], []>} : vector<16x64xbf16>, vector<64x128xbf16>, vector<16x128xf32> -> vector<16x128xf32>
    %c1_27 = arith.constant 1 : index
    %c0_28 = arith.constant 0 : index
    %c0_29 = arith.constant 0 : index
    %63 = vector.load %arg5[%c1_27, %c0_28, %c0_29] : memref<2x1x128xf32, #tpu.memory_space<vmem>>, vector<1x1x128xf32>
    %64 = vector.shape_cast %63 : vector<1x1x128xf32> to vector<1x128xf32>
    %65 = vector.broadcast %64 : vector<1x128xf32> to vector<16x128xf32>
    %66 = arith.addf %62, %65 : vector<16x128xf32>
    %67 = vector.extract_strided_slice %66 {offsets = [0, 0], sizes = [16, 64], strides = [1, 1]} : vector<16x128xf32> to vector<16x64xf32>
    %68 = vector.extract_strided_slice %66 {offsets = [0, 64], sizes = [16, 64], strides = [1, 1]} : vector<16x128xf32> to vector<16x64xf32>
    %69 = arith.negf %68 : vector<16x64xf32>
    %70 = math.exp %69 : vector<16x64xf32>
    %cst_30 = arith.constant 1.000000e+00 : f32
    %71 = vector.broadcast %cst_30 : f32 to vector<16x64xf32>
    %72 = arith.addf %71, %70 : vector<16x64xf32>
    %73 = arith.divf %71, %72 : vector<16x64xf32>
    %74 = arith.subf %67, %58 : vector<16x64xf32>
    %75 = arith.mulf %73, %74 : vector<16x64xf32>
    %76 = arith.addf %58, %75 : vector<16x64xf32>
    %77 = math.tanh %76 : vector<16x64xf32>
    %78 = arith.addf %39, %77 : vector<16x64xf32>
    %c0_31 = arith.constant 0 : index
    %c0_32 = arith.constant 0 : index
    %79 = vector.load %arg6[%c0_31, %c0_32] : memref<16x64xf32, #tpu.memory_space<vmem>>, vector<16x64xf32>
    tpu.vector_store %arg6[%c0_31, %c0_32], %78 {strides = array<i32>} : memref<16x64xf32, #tpu.memory_space<vmem>>, vector<16x64xf32>,
    return
  }
  func.func @transform_0(%arg0: i32) -> (i32, i32) {
    %c0_i32 = arith.constant 0 : i32
    %c0_i32_0 = arith.constant 0 : i32
    return %arg0, %c0_i32 : i32, i32
  }
  func.func @transform_1(%arg0: i32) -> (i32, i32, i32) {
    %c0_i32 = arith.constant 0 : i32
    %c0_i32_0 = arith.constant 0 : i32
    %c0_i32_1 = arith.constant 0 : i32
    %c0_i32_2 = arith.constant 0 : i32
    return %c0_i32, %c0_i32_0, %c0_i32_1 : i32, i32, i32
  }
  func.func @transform_2(%arg0: i32) -> (i32, i32, i32) {
    %c0_i32 = arith.constant 0 : i32
    %c0_i32_0 = arith.constant 0 : i32
    %c0_i32_1 = arith.constant 0 : i32
    %c0_i32_2 = arith.constant 0 : i32
    return %c0_i32, %c0_i32_0, %c0_i32_1 : i32, i32, i32
  }
  func.func @transform_3(%arg0: i32) -> (i32, i32, i32) {
    %c0_i32 = arith.constant 0 : i32
    %c0_i32_0 = arith.constant 0 : i32
    %c0_i32_1 = arith.constant 0 : i32
    %c0_i32_2 = arith.constant 0 : i32
    return %c0_i32, %c0_i32_0, %c0_i32_1 : i32, i32, i32
  }
  func.func @transform_4(%arg0: i32) -> (i32, i32, i32) {
    %c0_i32 = arith.constant 0 : i32
    %c0_i32_0 = arith.constant 0 : i32
    %c0_i32_1 = arith.constant 0 : i32
    %c0_i32_2 = arith.constant 0 : i32
    return %c0_i32, %c0_i32_0, %c0_i32_1 : i32, i32, i32
  }
  func.func @transform_5(%arg0: i32) -> (i32, i32) {
    %c0_i32 = arith.constant 0 : i32
    %c0_i32_0 = arith.constant 0 : i32
    return %arg0, %c0_i32 : i32, i32
  }
}

module attributes {stable_mosaic.version = 11 : i64} {
  func.func @_linear_kernel(%arg0: i32, %arg1: memref<64x16xf32, #tpu.memory_space<vmem>>, %arg2: memref<16x16xbf16, #tpu.memory_space<vmem>>, %arg3: memref<1x16xf32, #tpu.memory_space<vmem>>, %arg4: memref<64x16xf32, #tpu.memory_space<vmem>>) attributes {dimension_semantics = [#tpu.dimension_semantics<parallel>], iteration_bounds = array<i64: 1>, scalar_prefetch = 0 : i64, scratch_operands = 0 : i64, tpu.core_type = #tpu.core_type<tc>, window_params = [{transform_indices = @transform_0, window_bounds = array<i64: 64, 16>}, {pipeline_mode = #tpu.pipeline_mode<synchronous>, transform_indices = @transform_1, window_bounds = array<i64: 16, 16>}, {pipeline_mode = #tpu.pipeline_mode<synchronous>, transform_indices = @transform_2, window_bounds = array<i64: 1, 16>}, {transform_indices = @transform_3, window_bounds = array<i64: 64, 16>}]} {
    %c0 = arith.constant 0 : index
    %c0_0 = arith.constant 0 : index
    %0 = vector.load %arg1[%c0, %c0_0] : memref<64x16xf32, #tpu.memory_space<vmem>>, vector<64x16xf32>
    %1 = arith.truncf %0 : vector<64x16xf32> to vector<64x16xbf16>
    %c0_1 = arith.constant 0 : index
    %c0_2 = arith.constant 0 : index
    %2 = vector.load %arg2[%c0_1, %c0_2] : memref<16x16xbf16, #tpu.memory_space<vmem>>, vector<16x16xbf16>
    %cst = arith.constant dense<0.000000e+00> : vector<64x16xf32>
    %3 = tpu.matmul %1, %2, %cst {dimension_numbers = #tpu.dot_dimension_numbers<[1], [0], [0], [1], [0, 0, 1, 1], [], []>} : vector<64x16xbf16>, vector<16x16xbf16>, vector<64x16xf32> -> vector<64x16xf32>
    %c0_3 = arith.constant 0 : index
    %c0_4 = arith.constant 0 : index
    %4 = vector.load %arg3[%c0_3, %c0_4] : memref<1x16xf32, #tpu.memory_space<vmem>>, vector<1x16xf32>
    %5 = vector.broadcast %4 : vector<1x16xf32> to vector<64x16xf32>
    %6 = arith.addf %3, %5 : vector<64x16xf32>
    %c0_5 = arith.constant 0 : index
    %c0_6 = arith.constant 0 : index
    %7 = vector.load %arg4[%c0_5, %c0_6] : memref<64x16xf32, #tpu.memory_space<vmem>>, vector<64x16xf32>
    tpu.vector_store %arg4[%c0_5, %c0_6], %6 {strides = array<i32>} : memref<64x16xf32, #tpu.memory_space<vmem>>, vector<64x16xf32>,
    return
  }
  func.func @transform_0(%arg0: i32) -> (i32, i32) {
    %c0_i32 = arith.constant 0 : i32
    %c0_i32_0 = arith.constant 0 : i32
    return %arg0, %c0_i32 : i32, i32
  }
  func.func @transform_1(%arg0: i32) -> (i32, i32) {
    %c0_i32 = arith.constant 0 : i32
    %c0_i32_0 = arith.constant 0 : i32
    %c0_i32_1 = arith.constant 0 : i32
    return %c0_i32, %c0_i32_0 : i32, i32
  }
  func.func @transform_2(%arg0: i32) -> (i32, i32) {
    %c0_i32 = arith.constant 0 : i32
    %c0_i32_0 = arith.constant 0 : i32
    %c0_i32_1 = arith.constant 0 : i32
    return %c0_i32, %c0_i32_0 : i32, i32
  }
  func.func @transform_3(%arg0: i32) -> (i32, i32) {
    %c0_i32 = arith.constant 0 : i32
    %c0_i32_0 = arith.constant 0 : i32
    return %arg0, %c0_i32 : i32, i32
  }
}

</mosaic_0001>

<bundles_post_ra>
// kernel: reverse.0
= control target key start
LH: loop header
LB: loop body
LE: loop exit
PB: predicated region body
PF: predicated region fallthrough
CT: control target
= control target key end

     0   :  { %v2_v0 = vlaneseq  ;;  %s238_s0 = inlined_call_operand.vmem [shape: f32[2,4,8,7], index: 0, kind: input, shape index: {}]   ;;  %s239_s1 = inlined_call_operand.vmem [shape: f32[2,4,8,7], index: 1, kind: output, shape index: {}]  }
   0x1   :  { %v50_v2 = vld [vmem:[%s238_s0 + $0x10] sm:$0xff]  ;;  %v46_v3 = vld [vmem:[%s238_s0] sm:$0xff]  ;;  %v52_v4 = vld [vmem:[%s238_s0 + $0x18] sm:$0xff] }
   0x2   :  { %v3_v1 = vsub.s32 6, %v2_v0  ;;  %v48_v5 = vld [vmem:[%s238_s0 + $0x8] sm:$0xff]  ;;  %v54_v7 = vld [vmem:[%s238_s0 + $0x20] sm:$0xff]  ;;  %v60_v8 = vld [vmem:[%s238_s0 + $0x38] sm:$0xff] }
   0x3   :  { %v56_v6 = vld [vmem:[%s238_s0 + $0x28] sm:$0xff]  ;;  %v58_v9 = vld [vmem:[%s238_s0 + $0x30] sm:$0xff] }
   0x4   :  { %4 = vset.pattern.permute.xlu0 %v3_v1  ;;  %179 = vset.pattern.permute.xlu1 %v3_v1 }
   0x5   :  { %78 = vperm.xlu1 %179, %v50_v2   ;;  %66 = vperm.xlu0 %4, %v46_v3  }
   0x9   :  { %84 = vperm.xlu1 %179, %v52_v4   ;;  %72 = vperm.xlu0 %4, %v48_v5  }
   0xd   :  { %96 = vperm.xlu1 %179, %v56_v6   ;;  %90 = vperm.xlu0 %4, %v54_v7  }
  0x11   :  { %108 = vperm.xlu1 %179, %v60_v8   ;;  %102 = vperm.xlu0 %4, %v58_v9  }
  0x84   :  { %v79_v10 = vpop.permute.xlu1 %78  ;;  %v67_v11 = vpop.permute.xlu0 %66 }
  0x85   :  { %157 = vst [vmem:[%s239_s1 + $0x10] sm:$0xff] %v79_v10  ;;  %153 = vst [vmem:[%s239_s1] sm:$0xff] %v67_v11 }
  0x88   :  { %v85_v12 = vpop.permute.xlu1 %84  ;;  %v73_v13 = vpop.permute.xlu0 %72 }
  0x89   :  { %159 = vst [vmem:[%s239_s1 + $0x18] sm:$0xff] %v85_v12  ;;  %155 = vst [vmem:[%s239_s1 + $0x8] sm:$0xff] %v73_v13 }
  0x8c   :  { %v97_v14 = vpop.permute.xlu1 %96  ;;  %v91_v15 = vpop.permute.xlu0 %90 }
  0x8d   :  { %163 = vst [vmem:[%s239_s1 + $0x28] sm:$0xff] %v97_v14  ;;  %161 = vst [vmem:[%s239_s1 + $0x20] sm:$0xff] %v91_v15 }
  0x90   :  { %v109_v16 = vpop.permute.xlu1 %108  ;;  %v103_v17 = vpop.permute.xlu0 %102 }
  0x91   :  { %167 = vst [vmem:[%s239_s1 + $0x38] sm:$0xff] %v109_v16  ;;  %165 = vst [vmem:[%s239_s1 + $0x30] sm:$0xff] %v103_v17 }

// kernel: model_forward.3
= control target key start
LH: loop header
LB: loop body
LE: loop exit
PB: predicated region body
PF: predicated region fallthrough
CT: control target
= control target key end

     0   :  { %v703_v0 = vmov 0.0   ;;  %vm704_vm0 = vmmov 0   ;;  %vm63_vm1 = vcmask 523264   ;;  %s878_s1 = inlined_call_operand.vmem [shape: bf16[2,64,128], index: 1, kind: input, shape index: {}]   ;;  %s879_s0 = inlined_call_operand.vmem [shape: f32[16,64], index: 0, kind: input, shape index: {}]   ;;  %s880_s2 = inlined_call_operand.vmem [shape: f32[2,1,128], index: 2, kind: input, shape index: {}]   ;;  %s881_s3 = inlined_call_operand.vmem [shape: bf16[2,64,128], index: 3, kind: input, shape index: {}]   ;;  %s882_s4 = inlined_call_operand.vmem [shape: f32[2,1,128], index: 4, kind: input, shape index: {}]   ;;  %s883_s5 = inlined_call_operand.vmem [shape: f32[16,64], index: 5, kind: output, shape index: {}]  }
   0x1   :  { %588 = vmatprep.subr.bf16.mxu0 %v703_v0  ;;  %v639_v1 = vld [vmem:[%s878_s1] sm:$0xff]   ;;  %596 = vmatprep.mubr.msk.bf16.mxu0 %vm704_vm0, %v703_v0  ;;  %v640_v2 = vld [vmem:[%s878_s1 + $0x8] sm:$0xff]   ;;  %v641_v3 = vld [vmem:[%s878_s1 + $0x10] sm:$0xff]  }
   0x2   :  { %600 = vmatprep.subr.bf16.mxu1 %v703_v0  ;;  %608 = vmatprep.mubr.msk.bf16.mxu1 %vm704_vm0, %v703_v0  ;;  %v642_v4 = vld [vmem:[%s878_s1 + $0x18] sm:$0xff]   ;;  %v759_v5 = vld [vmem:[%s879_s0] sm:$0xff]  ;;  %v764_v6 = vld [vmem:[%s879_s0 + $0x8] sm:$0xff]  ;;  %s705_s0 = smov 64  }
   0x3   :  { %589 = vmatpush3.bf16.msra.mxu0 %v639_v1  ;;  %v23_v7 = vpack.c.bf16 %v764_v6, %v759_v5  ;;  %v518_v8 = vld [vmem:[%s880_s2] ss:$0 sm:$0xff]  ;;  %v644_v24 = vld [vmem:[%s881_s3 + $0x8] sm:$0xff]   ;;  %v645_v25 = vld [vmem:[%s881_s3 + $0x10] sm:$0xff]  }
   0x4   :  { %590 = vmatprep.subr.bf16.mxu0 %v703_v0  ;;  %v643_v23 = vld [vmem:[%s881_s3] sm:$0xff]   ;;  %v646_v29 = vld [vmem:[%s881_s3 + $0x18] sm:$0xff]   ;;  %v648_v56 = vld [vmem:[%s878_s1 + $0x28] sm:$0xff]  }
   0x5   :  { %601 = vmatpush3.bf16.msra.mxu1 %v643_v23  ;;  %v526_v40 = vld [vmem:[%s882_s4] ss:$0 sm:$0xff]  ;;  %v649_v59 = vld [vmem:[%s878_s1 + $0x30] sm:$0xff]   ;;  %v650_v1 = vld [vmem:[%s878_s1 + $0x38] sm:$0xff]  }
   0x6   :  { %602 = vmatprep.subr.bf16.mxu1 %v703_v0  ;;  %v647_v55 = vld [vmem:[%s878_s1 + $0x20] sm:$0xff]  }
   0x7   :  { %591 = vmatpush3.bf16.msra.mxu0 %v640_v2 }
   0x8   :  { %592 = vmatprep.subr.bf16.mxu0 %v703_v0 }
   0x9   :  { %603 = vmatpush3.bf16.msra.mxu1 %v644_v24 }
   0xa   :  { %604 = vmatprep.subr.bf16.mxu1 %v703_v0 }
   0xb   :  { %593 = vmatpush3.bf16.msra.mxu0 %v641_v3 }
   0xc   :  { %594 = vmatprep.subr.bf16.mxu0 %v703_v0 }
   0xd   :  { %605 = vmatpush3.bf16.msra.mxu1 %v645_v25 }
   0xe   :  { %606 = vmatprep.subr.bf16.mxu1 %v703_v0 }
   0xf   :  { %595 = vmatpush3.bf16.msra.mxu0 %v642_v4 }
  0x10   :  { %612 = vmatprep.subr.bf16.mxu0 %v703_v0 }
  0x11   :  { %607 = vmatpush3.bf16.msra.mxu1 %v646_v29 }
  0x12   :  { %597 = vmatmul.mubr.msk.bf16.vlgmr.msra.gmra.mrb[0].mxu0 %vm63_vm1, %v23_v7  ;;  %624 = vmatprep.subr.bf16.mxu1 %v703_v0 }
  0x13   :  { %620 = vmatprep.mubr.msk.bf16.mxu0 %vm704_vm0, %v703_v0  ;;  %613 = vmatpush3.bf16.msra.mxu0 %v647_v55 }
  0x14   :  { %614 = vmatprep.subr.bf16.mxu0 %v703_v0 }
  0x17   :  { %615 = vmatpush3.bf16.msra.mxu0 %v648_v56 }
  0x18   :  { %616 = vmatprep.subr.bf16.mxu0 %v703_v0 }
  0x1b   :  { %617 = vmatpush3.bf16.msra.mxu0 %v649_v59 }
  0x1c   :  { %618 = vmatprep.subr.bf16.mxu0 %v703_v0 }
  0x1f   :  { %619 = vmatpush3.bf16.msra.mxu0 %v650_v1 }
  0xe5   :  { %v101_v9 = vpop.f32.mrb[0].mxu0 }
  0xe6   :  { %v102_v10 = vadd.f32 %v518_v8, %v101_v9  ;;  %v598_v11 = vpop.f32.mrb[1].mxu0 }
  0xe7   :  { %v104_v12 = vpop.f32.mrb[2].mxu0 }
  0xe8   :  { %v105_v13 = vadd.f32 %v518_v8, %v104_v12  ;;  %v599_v14 = vpop.f32.mrb[3].mxu0  ;;  %v120_v15 = vsub.f32 %v102_v10, %v759_v5  ;;  %v524_v17 = vmul.f32 -1.442695, %v102_v10 }
  0xea   :  { %124 = vrot.lane.b32.xlu0 %v120_v15, %s705_s0  ;;  %v121_v16 = vsub.f32 %v105_v13, %v764_v6  ;;  %655 = vpow2.f32 %v524_v17  ;;  %v525_v18 = vmul.f32 -1.442695, %v105_v13  ;;  %v543_v13 = vld [vmem:[%s880_s2 + $0x1] ss:$0 sm:$0xff] }
  0xec   :  { %657 = vpow2.f32 %v525_v18 }
  0xee   :  { %126 = vrot.lane.b32.xlu0 %v121_v16, %s705_s0 }
  0xf4   :  { %v656_v19 = vpop.eup %655 }
  0xf5   :  { %v114_v20 = vadd.f32 1.0, %v656_v19 }
  0xf6   :  { %v658_v21 = vpop.eup %657 }
  0xf7   :  { %659 = vrcp.f32 %v114_v20  ;;  %v115_v22 = vadd.f32 1.0, %v658_v21 }
  0xf9   :  { %661 = vrcp.f32 %v115_v22 }
 0x101   :  { %v660_v26 = vpop.eup %659 }
 0x103   :  { %v662_v30 = vpop.eup %661 }
 0x15c   :  { %v125_v27 = vpop.permute.xlu0 %124 }
 0x15d   :  { %v130_v28 = vmul.f32 %v660_v26, %v125_v27  ;;  %v651_v26 = vld [vmem:[%s881_s3 + $0x20] sm:$0xff]   ;;  %v652_v27 = vld [vmem:[%s881_s3 + $0x28] sm:$0xff]  }
 0x15f   :  { %134 = vrot.lane.b32.xlu1 %v130_v28, %s705_s0  ;;  %v653_v28 = vld [vmem:[%s881_s3 + $0x30] sm:$0xff]  }
 0x160   :  { %v127_v31 = vpop.permute.xlu0 %126 }
 0x161   :  { %v131_v32 = vmul.f32 %v662_v30, %v127_v31  ;;  %v654_v31 = vld [vmem:[%s881_s3 + $0x38] sm:$0xff]  }
 0x163   :  { %136 = vrot.lane.b32.xlu1 %v131_v32, %s705_s0 }
 0x1d1   :  { %v135_v33 = vpop.permute.xlu1 %134 }
 0x1d2   :  { %v140_v34 = vadd.f32 %v135_v33, %v759_v5 }
 0x1d4   :  { %663 = vtanh.f32 %v140_v34 }
 0x1d5   :  { %v137_v35 = vpop.permute.xlu1 %136 }
 0x1d6   :  { %v141_v36 = vadd.f32 %v137_v35, %v764_v6 }
 0x1d8   :  { %665 = vtanh.f32 %v141_v36 }
 0x1de   :  { %v664_v37 = vpop.eup %663 }
 0x1e2   :  { %v666_v38 = vpop.eup %665 }
 0x1e3   :  { %v144_v39 = vpack.c.bf16 %v666_v38, %v664_v37 }
 0x1e5   :  { %609 = vmatmul.mubr.msk.bf16.vlgmr.msra.gmra.mrb[0].mxu1 %vm63_vm1, %v144_v39 }
 0x1e6   :  { %632 = vmatprep.mubr.msk.bf16.mxu1 %vm704_vm0, %v703_v0  ;;  %625 = vmatpush3.bf16.msra.mxu1 %v651_v26 }
 0x1e7   :  { %626 = vmatprep.subr.bf16.mxu1 %v703_v0 }
 0x1ea   :  { %627 = vmatpush3.bf16.msra.mxu1 %v652_v27 }
 0x1eb   :  { %628 = vmatprep.subr.bf16.mxu1 %v703_v0 }
 0x1ee   :  { %629 = vmatpush3.bf16.msra.mxu1 %v653_v28 }
 0x1ef   :  { %630 = vmatprep.subr.bf16.mxu1 %v703_v0  ;;  %v560_v0 = vld [vmem:[%s882_s4 + $0x1] ss:$0 sm:$0xff] }
 0x1f2   :  { %631 = vmatpush3.bf16.msra.mxu1 %v654_v31 }
 0x2b8   :  { %v221_v41 = vpop.f32.mrb[0].mxu1 }
 0x2b9   :  { %v222_v42 = vadd.f32 %v526_v40, %v221_v41  ;;  %v610_v43 = vpop.f32.mrb[1].mxu1 }
 0x2ba   :  { %v224_v44 = vpop.f32.mrb[2].mxu1 }
 0x2bb   :  { %v240_v45 = vsub.f32 %v222_v42, %v664_v37  ;;  %v225_v46 = vadd.f32 %v526_v40, %v224_v44  ;;  %v611_v47 = vpop.f32.mrb[3].mxu1  ;;  %v532_v49 = vmul.f32 -1.442695, %v222_v42 }
 0x2bd   :  { %v241_v48 = vsub.f32 %v225_v46, %v666_v38  ;;  %244 = vrot.lane.b32.xlu0 %v240_v45, %s705_s0  ;;  %v533_v50 = vmul.f32 -1.442695, %v225_v46  ;;  %667 = vpow2.f32 %v532_v49 }
 0x2bf   :  { %246 = vrot.lane.b32.xlu1 %v241_v48, %s705_s0  ;;  %669 = vpow2.f32 %v533_v50 }
 0x2c7   :  { %v668_v51 = vpop.eup %667 }
 0x2c8   :  { %v234_v53 = vadd.f32 1.0, %v668_v51 }
 0x2c9   :  { %v670_v52 = vpop.eup %669 }
 0x2ca   :  { %v235_v54 = vadd.f32 1.0, %v670_v52  ;;  %671 = vrcp.f32 %v234_v53 }
 0x2cc   :  { %673 = vrcp.f32 %v235_v54 }
 0x2d4   :  { %v672_v57 = vpop.eup %671 }
 0x2d6   :  { %v674_v61 = vpop.eup %673 }
 0x32f   :  { %v245_v58 = vpop.permute.xlu0 %244 }
 0x330   :  { %v250_v60 = vmul.f32 %v672_v57, %v245_v58 }
 0x331   :  { %v247_v62 = vpop.permute.xlu1 %246 }
 0x332   :  { %v251_v63 = vmul.f32 %v674_v61, %v247_v62  ;;  %254 = vrot.lane.b32.xlu0 %v250_v60, %s705_s0 }
 0x334   :  { %256 = vrot.lane.b32.xlu1 %v251_v63, %s705_s0 }
 0x3a4   :  { %v255_v2 = vpop.permute.xlu0 %254 }
 0x3a5   :  { %v260_v3 = vadd.f32 %v664_v37, %v255_v2 }
 0x3a6   :  { %v257_v4 = vpop.permute.xlu1 %256 }
 0x3a7   :  { %675 = vtanh.f32 %v260_v3  ;;  %v261_v7 = vadd.f32 %v666_v38, %v257_v4 }
 0x3a9   :  { %677 = vtanh.f32 %v261_v7 }
 0x3b1   :  { %v676_v8 = vpop.eup %675 }
 0x3b2   :  { %v826_v10 = vadd.f32 %v676_v8, %v759_v5 }
 0x3b3   :  { %v678_v9 = vpop.eup %677 }
 0x3b4   :  { %v829_v11 = vadd.f32 %v678_v9, %v764_v6 }
 0x3b6   :  { %v266_v12 = vpack.c.bf16 %v829_v11, %v826_v10 }
 0x3b8   :  { %621 = vmatmul.mubr.msk.bf16.vlgmr.msra.gmra.mrb[4].mxu0 %vm63_vm1, %v266_v12 }
 0x48b   :  { %v345_v14 = vpop.f32.mrb[4].mxu0 }
 0x48c   :  { %v346_v15 = vadd.f32 %v543_v13, %v345_v14  ;;  %v622_v16 = vpop.f32.mrb[5].mxu0 }
 0x48d   :  { %v348_v17 = vpop.f32.mrb[6].mxu0 }
 0x48e   :  { %v364_v18 = vsub.f32 %v346_v15, %v826_v10  ;;  %v349_v5 = vadd.f32 %v543_v13, %v348_v17  ;;  %v623_v19 = vpop.f32.mrb[7].mxu0  ;;  %v549_v20 = vmul.f32 -1.442695, %v346_v15 }
 0x490   :  { %v365_v6 = vsub.f32 %v349_v5, %v829_v11  ;;  %368 = vrot.lane.b32.xlu0 %v364_v18, %s705_s0  ;;  %v550_v21 = vmul.f32 -1.442695, %v349_v5  ;;  %679 = vpow2.f32 %v549_v20 }
 0x492   :  { %370 = vrot.lane.b32.xlu1 %v365_v6, %s705_s0  ;;  %681 = vpow2.f32 %v550_v21 }
 0x49a   :  { %v680_v22 = vpop.eup %679 }
 0x49b   :  { %v358_v24 = vadd.f32 1.0, %v680_v22 }
 0x49c   :  { %v682_v23 = vpop.eup %681 }
 0x49d   :  { %v359_v25 = vadd.f32 1.0, %v682_v23  ;;  %683 = vrcp.f32 %v358_v24 }
 0x49f   :  { %685 = vrcp.f32 %v359_v25 }
 0x4a7   :  { %v684_v29 = vpop.eup %683 }
 0x4a9   :  { %v686_v33 = vpop.eup %685 }
 0x502   :  { %v369_v30 = vpop.permute.xlu0 %368 }
 0x503   :  { %v374_v32 = vmul.f32 %v684_v29, %v369_v30 }
 0x504   :  { %v371_v34 = vpop.permute.xlu1 %370 }
 0x505   :  { %v375_v35 = vmul.f32 %v686_v33, %v371_v34  ;;  %378 = vrot.lane.b32.xlu0 %v374_v32, %s705_s0 }
 0x507   :  { %380 = vrot.lane.b32.xlu1 %v375_v35, %s705_s0 }
 0x577   :  { %v379_v36 = vpop.permute.xlu0 %378 }
 0x578   :  { %v384_v37 = vadd.f32 %v379_v36, %v826_v10 }
 0x579   :  { %v381_v38 = vpop.permute.xlu1 %380 }
 0x57a   :  { %v385_v39 = vadd.f32 %v381_v38, %v829_v11  ;;  %687 = vtanh.f32 %v384_v37 }
 0x57c   :  { %689 = vtanh.f32 %v385_v39 }
 0x584   :  { %v688_v40 = vpop.eup %687 }
 0x586   :  { %v690_v41 = vpop.eup %689 }
 0x587   :  { %v388_v42 = vpack.c.bf16 %v690_v41, %v688_v40 }
 0x589   :  { %633 = vmatmul.mubr.msk.bf16.vlgmr.msra.gmra.mrb[4].mxu1 %vm63_vm1, %v388_v42 }
 0x65c   :  { %v467_v43 = vpop.f32.mrb[4].mxu1 }
 0x65d   :  { %v468_v44 = vadd.f32 %v560_v0, %v467_v43  ;;  %v634_v45 = vpop.f32.mrb[5].mxu1 }
 0x65e   :  { %v470_v46 = vpop.f32.mrb[6].mxu1 }
 0x65f   :  { %v486_v47 = vsub.f32 %v468_v44, %v688_v40  ;;  %v471_v48 = vadd.f32 %v560_v0, %v470_v46  ;;  %v635_v49 = vpop.f32.mrb[7].mxu1  ;;  %v566_v51 = vmul.f32 -1.442695, %v468_v44 }
 0x661   :  { %v487_v50 = vsub.f32 %v471_v48, %v690_v41  ;;  %490 = vrot.lane.b32.xlu0 %v486_v47, %s705_s0  ;;  %v567_v52 = vmul.f32 -1.442695, %v471_v48  ;;  %691 = vpow2.f32 %v566_v51 }
 0x663   :  { %492 = vrot.lane.b32.xlu1 %v487_v50, %s705_s0  ;;  %693 = vpow2.f32 %v567_v52 }
 0x66b   :  { %v692_v53 = vpop.eup %691 }
 0x66c   :  { %v480_v55 = vadd.f32 1.0, %v692_v53 }
 0x66d   :  { %v694_v54 = vpop.eup %693 }
 0x66e   :  { %v481_v56 = vadd.f32 1.0, %v694_v54  ;;  %695 = vrcp.f32 %v480_v55 }
 0x670   :  { %697 = vrcp.f32 %v481_v56 }
 0x678   :  { %v696_v57 = vpop.eup %695 }
 0x67a   :  { %v698_v60 = vpop.eup %697 }
 0x6d3   :  { %v491_v58 = vpop.permute.xlu0 %490 }
 0x6d4   :  { %v496_v59 = vmul.f32 %v696_v57, %v491_v58 }
 0x6d5   :  { %v493_v61 = vpop.permute.xlu1 %492 }
 0x6d6   :  { %v497_v62 = vmul.f32 %v698_v60, %v493_v61  ;;  %500 = vrot.lane.b32.xlu0 %v496_v59, %s705_s0 }
 0x6d8   :  { %502 = vrot.lane.b32.xlu1 %v497_v62, %s705_s0 }
 0x748   :  { %v501_v63 = vpop.permute.xlu0 %500 }
 0x749   :  { %v506_v1 = vadd.f32 %v688_v40, %v501_v63 }
 0x74a   :  { %v503_v2 = vpop.permute.xlu1 %502 }
 0x74b   :  { %699 = vtanh.f32 %v506_v1  ;;  %v507_v3 = vadd.f32 %v690_v41, %v503_v2 }
 0x74d   :  { %701 = vtanh.f32 %v507_v3 }
 0x755   :  { %v700_v4 = vpop.eup %699 }
 0x756   :  { %v510_v7 = vadd.f32 %v700_v4, %v826_v10 }
 0x757   :  { %v702_v8 = vpop.eup %701 }
 0x758   :  { %512 = vst.msk [vmem:[%s883_s5] sm:$0xff] %vm63_vm1, %v510_v7  ;;  %v511_v9 = vadd.f32 %v702_v8, %v829_v11 }
 0x75a   :  { %513 = vst.msk [vmem:[%s883_s5 + $0x8] sm:$0xff] %vm63_vm1, %v511_v9 }

// kernel: model_forward.2
= control target key start
LH: loop header
LB: loop body
LE: loop exit
PB: predicated region body
PF: predicated region fallthrough
CT: control target
= control target key end

     0   :  { %vm42_vm0 = vcmask 130048   ;;  %s242_s1 = inlined_call_operand.vmem [shape: bf16[16,16], index: 1, kind: input, shape index: {}]   ;;  %s243_s0 = inlined_call_operand.vmem [shape: f32[64,16], index: 0, kind: input, shape index: {}]   ;;  %s244_s2 = inlined_call_operand.vmem [shape: f32[1,16], index: 2, kind: input, shape index: {}]   ;;  %s245_s3 = inlined_call_operand.vmem [shape: f32[64,16], index: 3, kind: output, shape index: {}]  }
   0x1   :  { %v155_v0 = vld [vmem:[%s242_s1] sm:$0xff]   ;;  %v16_v2 = vld [vmem:[%s243_s0 + $0x8] sm:$0xff]  ;;  %v17_v6 = vld [vmem:[%s243_s0 + $0x10] sm:$0xff] }
   0x2   :  { %v15_v1 = vld [vmem:[%s243_s0] sm:$0xff]  ;;  %143 = vmatprep.subr.bf16.mxu0 %v155_v0  ;;  %153 = vmatprep.subr.bf16.mxu1 %v155_v0  ;;  %v20_v5 = vld [vmem:[%s243_s0 + $0x28] sm:$0xff]  ;;  %v18_v7 = vld [vmem:[%s243_s0 + $0x18] sm:$0xff] }
   0x3   :  { %v19_v3 = vld [vmem:[%s243_s0 + $0x20] sm:$0xff]  ;;  %v23_v4 = vpack.c.bf16 %v16_v2, %v15_v1  ;;  %144 = vmatpush3.bf16.msra.mxu0 %v155_v0  ;;  %154 = vmatpush3.bf16.msra.mxu1 %v155_v0  ;;  %v24_v9 = vpack.c.bf16 %v18_v7, %v17_v6  ;;  %v21_v10 = vld [vmem:[%s243_s0 + $0x30] sm:$0xff]  ;;  %v22_v11 = vld [vmem:[%s243_s0 + $0x38] sm:$0xff] }
   0x4   :  { %v25_v8 = vpack.c.bf16 %v20_v5, %v19_v3  ;;  %v26_v12 = vpack.c.bf16 %v22_v11, %v21_v10  ;;  %v132_v13 = vld [vmem:[%s244_s2] ss:$0 sm:$0xff] }
   0x5   :  { %145 = vmatprep.mubr.msk.bf16.mxu0 %vm42_vm0, %v23_v4 }
   0x6   :  { %149 = vmatprep.mubr.msk.bf16.mxu1 %vm42_vm0, %v25_v8  ;;  %146 = vmatmul.mubr.msk.bf16.vlgmr.msra.gmra.mrb[0].mxu0 %vm42_vm0, %v24_v9 }
   0x7   :  { %150 = vmatmul.mubr.msk.bf16.vlgmr.msra.gmra.mrb[0].mxu1 %vm42_vm0, %v26_v12 }
  0xd9   :  { %v147_v14 = vpop.f32.mrb[0].mxu0 }
  0xda   :  { %v151_v15 = vpop.f32.mrb[0].mxu1  ;;  %v98_v16 = vadd.f32 %v147_v14, %v132_v13  ;;  %v89_v18 = vpop.f32.mrb[1].mxu0 }
  0xdb   :  { %v114_v17 = vadd.f32 %v151_v15, %v132_v13  ;;  %v105_v19 = vpop.f32.mrb[1].mxu1  ;;  %v90_v20 = vadd.f32 %v132_v13, %v89_v18  ;;  %v148_v22 = vpop.f32.mrb[2].mxu0 }
  0xdc   :  { %v106_v21 = vadd.f32 %v132_v13, %v105_v19  ;;  %v152_v23 = vpop.f32.mrb[2].mxu1  ;;  %122 = vst.msk [vmem:[%s245_s3 + $0x10] sm:$0xff] %vm42_vm0, %v98_v16  ;;  %v101_v24 = vadd.f32 %v148_v22, %v132_v13  ;;  %v92_v26 = vpop.f32.mrb[3].mxu0 }
  0xdd   :  { %126 = vst.msk [vmem:[%s245_s3 + $0x30] sm:$0xff] %vm42_vm0, %v114_v17  ;;  %v117_v25 = vadd.f32 %v152_v23, %v132_v13  ;;  %v108_v27 = vpop.f32.mrb[3].mxu1  ;;  %120 = vst.msk [vmem:[%s245_s3] sm:$0xff] %vm42_vm0, %v90_v20  ;;  %v93_v28 = vadd.f32 %v132_v13, %v92_v26 }
  0xde   :  { %124 = vst.msk [vmem:[%s245_s3 + $0x20] sm:$0xff] %vm42_vm0, %v106_v21  ;;  %v109_v29 = vadd.f32 %v132_v13, %v108_v27  ;;  %123 = vst.msk [vmem:[%s245_s3 + $0x18] sm:$0xff] %vm42_vm0, %v101_v24 }
  0xdf   :  { %127 = vst.msk [vmem:[%s245_s3 + $0x38] sm:$0xff] %vm42_vm0, %v117_v25  ;;  %121 = vst.msk [vmem:[%s245_s3 + $0x8] sm:$0xff] %vm42_vm0, %v93_v28 }
  0xe0   :  { %125 = vst.msk [vmem:[%s245_s3 + $0x28] sm:$0xff] %vm42_vm0, %v109_v29 }

</bundles_post_ra>
